<compile_context>
chip_gen: v6e
topology: v6e:2x2x1
jax: 0.10.0
libtpu: 0.0.40
codegen_flags: <defaults>
</compile_context>

<pallas_src>
import functools

import jax
import jax.numpy as jnp
from jax import lax
from jax.experimental import pallas as pl
from jax.experimental.pallas import tpu as pltpu


def _round_up(x: int, m: int) -> int:
    return ((x + m - 1) // m) * m


def decoder_linear_kernel(x_ref, w_ref, s_ref, o_ref, *, in_w_valid, in_w_padded):
    # decoded = ReLU(x @ W) -- MXU matmul, f32 accumulation (bf16 inputs OK).
    decoded = jnp.dot(x_ref[...], w_ref[...], preferred_element_type=jnp.float32)
    decoded = jnp.maximum(decoded, 0.0)

    # Row softmax over the feature axis (PyTorch dim=1), numerically stable.
    # Padded W columns give decoded == 0, which never exceeds the row max
    # (ReLU output is >= 0), so the max needs no masking.
    m = jnp.max(decoded, axis=-1, keepdims=True)
    e = jnp.exp(decoded - m)

    if in_w_valid < in_w_padded:
        # Single (1, in_W_pad) 0/1 mask multiply: excludes padded columns from
        # the softmax sum AND zeroes them in the stored output.
        col = lax.broadcasted_iota(jnp.int32, (1, in_w_padded), 1)
        e = e * (col < in_w_valid).astype(e.dtype)

    denom = jnp.sum(e, axis=-1, keepdims=True)

    # Fold the LogNormal sample s into the (TB,1) reciprocal so the output
    # needs only one full-tile multiply. EUP vrcp -> frees VALU slots.
    inv = s_ref[...] * pl.reciprocal(denom, approx=True)
    o_ref[...] = (e * inv).astype(o_ref.dtype)


def prepare_decoder_weight(w, *, compute_dtype=jnp.bfloat16):
    """One-time weight prep: cast to matmul dtype + lane-pad columns to 128x."""
    latent_dim, in_w = w.shape
    in_w_pad = _round_up(in_w, 128)
    w_p = w.astype(compute_dtype)
    if in_w_pad != in_w:
        w_p = jnp.pad(w_p, ((0, 0), (0, in_w_pad - in_w)))
    return w_p, in_w


def decoder_linear_forward(x, w_padded, lib_mu, lib_var, eps, *, in_w_valid,
                           block_b: int = 512,
                           out_dtype=jnp.float32):
    """Returns p_padded of shape (B_pad, in_W_pad); the padding region is zero.

    p_padded[:B, :in_w_valid] == exp(lib_mu + lib_var*eps)
                                 * softmax(relu(x @ w), axis=1)
    """
    B, latent_dim = x.shape
    ld_w, in_w_pad = w_padded.shape
    assert ld_w == latent_dim, "weight must be (latent_dim, in_W_pad)"
    assert in_w_pad % 128 == 0 and 0 < in_w_valid <= in_w_pad
    compute_dtype = w_padded.dtype

    # Reparameterized LogNormal sample, collapsed to one (B,1) input (O(B) glue).
    # TODO(synk): could generate eps in-kernel with pltpu.prng_*; host-provided
    # noise kept for determinism.
    s = jnp.exp(lib_mu.astype(jnp.float32)
                + lib_var.astype(jnp.float32) * eps.astype(jnp.float32))

    # Batch tile: multiple of 8, <= block_b, and targeting >= 2 tiles so the
    # ("parallel",) grid can be sharded across v7x's two TensorCores.
    block_b = _round_up(max(int(block_b), 8), 8)          # guard user input
    two_tile_cap = _round_up(pl.cdiv(B, 2), 8)
    TB = max(8, min(block_b, two_tile_cap))
    B_pad = _round_up(B, TB)

    x_p = x.astype(compute_dtype)
    if B_pad != B:
        x_p = jnp.pad(x_p, ((0, B_pad - B), (0, 0)))
        s = jnp.pad(s, ((0, B_pad - B), (0, 0)))          # padded rows -> s=0 -> output 0

    kernel = functools.partial(decoder_linear_kernel,
                               in_w_valid=in_w_valid, in_w_padded=in_w_pad)

    # VMEM budget: double-buffered x / W / s / out tiles plus headroom.
    # Clamp to 64 MiB so the plan stays valid on v7x (64 MiB physical VMEM).
    itemsize_in = jnp.dtype(compute_dtype).itemsize
    itemsize_out = jnp.dtype(out_dtype).itemsize
    vmem_need = (2 * (TB * latent_dim + latent_dim * in_w_pad) * itemsize_in
                 + 2 * TB * 4
                 + 2 * TB * in_w_pad * itemsize_out)
    vmem_limit = int(min(max(2 * vmem_need, 16 << 20), 64 << 20))

    out = pl.pallas_call(
        kernel,
        out_shape=jax.ShapeDtypeStruct((B_pad, in_w_pad), out_dtype),
        grid_spec=pltpu.PrefetchScalarGridSpec(
            num_scalar_prefetch=0,
            grid=(B_pad // TB,),
            in_specs=[
                # x: one batch tile per grid step -> pipelined DMA.
                pl.BlockSpec((TB, latent_dim), lambda i: (i, 0)),
                # W: constant block -> fetched once, VMEM-resident across tiles.
                pl.BlockSpec((latent_dim, in_w_pad), lambda i: (0, 0)),
                # s: per-tile scalar column.
                pl.BlockSpec((TB, 1), lambda i: (i, 0)),
            ],
            out_specs=pl.BlockSpec((TB, in_w_pad), lambda i: (i, 0)),
        ),
        compiler_params=pltpu.CompilerParams(
            dimension_semantics=("parallel",),
            vmem_limit_bytes=vmem_limit,
        ),
    )(x_p, w_padded, s)

    return out


if __name__ == "__main__":
    # Small shapes implied by the module: latent -> in_W linear.
    # Deliberately NOT multiples of the tile sizes, to exercise padding/masking.
    B = 250
    latent_dim = 32
    in_W = 200

    key = jax.random.PRNGKey(0)
    k_x, k_w, k_mu, k_var, k_eps = jax.random.split(key, 5)

    x = jax.random.normal(k_x, (B, latent_dim), dtype=jnp.float32)
    bound = 1.0 / float(jnp.sqrt(latent_dim))
    w = jax.random.uniform(k_w, (latent_dim, in_W), dtype=jnp.float32,
                           minval=-bound, maxval=bound)
    lib_mu = jax.random.normal(k_mu, (B, 1), dtype=jnp.float32)
    lib_var = jax.nn.softplus(jax.random.normal(k_var, (B, 1), dtype=jnp.float32))
    # Gaussian noise for the LogNormal reparameterized sample (glue, not hot path).
    eps = jax.random.normal(k_eps, (B, 1), dtype=jnp.float32)

    # One-time weight prep (cast to bf16 + lane-pad) -- hoisted out of the call.
    w_padded, in_w_valid = prepare_decoder_weight(w, compute_dtype=jnp.bfloat16)

    p_pad = decoder_linear_forward(x, w_padded, lib_mu, lib_var, eps,
                                   in_w_valid=in_w_valid, block_b=512)
    p_pad = jax.block_until_ready(p_pad)
    p = p_pad[:B, :in_W]   # consumer-side view for the correctness check

    # Reference in plain JAX, with matmul inputs rounded to bf16 to mirror the
    # kernel's bf16-in / f32-accumulate MXU matmul.
    xb = x.astype(jnp.bfloat16).astype(jnp.float32)
    wb = w.astype(jnp.bfloat16).astype(jnp.float32)
    decoded_ref = jnp.maximum(xb @ wb, 0.0)
    scale_ref = jax.nn.softmax(decoded_ref, axis=1)
    s_ref = jnp.exp(lib_mu + lib_var * eps)
    p_ref = s_ref * scale_ref

    assert p.shape == p_ref.shape, "shape mismatch vs reference"
    # approx=True reciprocal -> slightly looser tolerance than exact f32.
    assert jnp.allclose(p, p_ref, atol=1e-5, rtol=5e-3), "mismatch vs reference"
    # Padding region of the returned buffer must be exactly zero.
    assert float(jnp.abs(p_pad[:, in_W:]).max()) == 0.0, "nonzero column padding"
    assert float(jnp.abs(p_pad[B:, :]).max()) == 0.0, "nonzero row padding"

    print("KERNEL_OK")
</pallas_src>

<mosaic_0001>
module attributes {stable_mosaic.version = 11 : i64} {
  func.func @decoder_linear_kernel(%arg0: i32, %arg1: memref<128x32xbf16, #tpu.memory_space<vmem>>, %arg2: memref<32x256xbf16, #tpu.memory_space<vmem>>, %arg3: memref<128x1xf32, #tpu.memory_space<vmem>>, %arg4: memref<128x256xf32, #tpu.memory_space<vmem>>) attributes {dimension_semantics = [#tpu.dimension_semantics<parallel>], iteration_bounds = array<i64: 2>, scalar_prefetch = 0 : i64, scratch_operands = 0 : i64, tpu.core_type = #tpu.core_type<tc>, window_params = [{transform_indices = @transform_0, window_bounds = array<i64: 128, 32>}, {pipeline_mode = #tpu.pipeline_mode<synchronous>, transform_indices = @transform_1, window_bounds = array<i64: 32, 256>}, {transform_indices = @transform_2, window_bounds = array<i64: 128, 1>}, {transform_indices = @transform_3, window_bounds = array<i64: 128, 256>}]} {
    %c0 = arith.constant 0 : index
    %c0_0 = arith.constant 0 : index
    %0 = vector.load %arg1[%c0, %c0_0] : memref<128x32xbf16, #tpu.memory_space<vmem>>, vector<128x32xbf16>
    %c0_1 = arith.constant 0 : index
    %c0_2 = arith.constant 0 : index
    %1 = vector.load %arg2[%c0_1, %c0_2] : memref<32x256xbf16, #tpu.memory_space<vmem>>, vector<32x256xbf16>
    %cst = arith.constant dense<0.000000e+00> : vector<128x256xf32>
    %2 = tpu.matmul %0, %1, %cst {dimension_numbers = #tpu.dot_dimension_numbers<[1], [0], [0], [1], [0, 0, 1, 1], [], []>} : vector<128x32xbf16>, vector<32x256xbf16>, vector<128x256xf32> -> vector<128x256xf32>
    %cst_3 = arith.constant 0.000000e+00 : f32
    %3 = vector.broadcast %cst_3 : f32 to vector<128x256xf32>
    %4 = arith.maximumf %2, %3 : vector<128x256xf32>
    %cst_4 = arith.constant dense<0xFF800000> : vector<128xf32>
    %5 = vector.multi_reduction <maximumf>, %4, %cst_4 [1] : vector<128x256xf32> to vector<128xf32>
    %6 = vector.shape_cast %5 : vector<128xf32> to vector<128x1xf32>
    %7 = vector.broadcast %6 : vector<128x1xf32> to vector<128x256xf32>
    %8 = arith.subf %4, %7 : vector<128x256xf32>
    %9 = math.exp %8 : vector<128x256xf32>
    %10 = tpu.iota {dimensions = array<i32: 1>} : vector<1x256xi32>
    %c200_i32 = arith.constant 200 : i32
    %11 = vector.broadcast %c200_i32 : i32 to vector<1x256xi32>
    %12 = arith.cmpi slt, %10, %11 : vector<1x256xi32>
    %13 = arith.extui %12 : vector<1x256xi1> to vector<1x256xi32>
    %14 = arith.sitofp %13 : vector<1x256xi32> to vector<1x256xf32>
    %15 = vector.broadcast %14 : vector<1x256xf32> to vector<128x256xf32>
    %16 = arith.mulf %9, %15 : vector<128x256xf32>
    %cst_5 = arith.constant dense<0.000000e+00> : vector<128xf32>
    %17 = vector.multi_reduction <add>, %16, %cst_5 [1] : vector<128x256xf32> to vector<128xf32>
    %18 = vector.shape_cast %17 : vector<128xf32> to vector<128x1xf32>
    %c0_6 = arith.constant 0 : index
    %c0_7 = arith.constant 0 : index
    %19 = vector.load %arg3[%c0_6, %c0_7] : memref<128x1xf32, #tpu.memory_space<vmem>>, vector<128x1xf32>
    %20 = tpu.reciprocal %18 {approx = true} : vector<128x1xf32> -> vector<128x1xf32>
    %21 = arith.mulf %19, %20 : vector<128x1xf32>
    %22 = vector.broadcast %21 : vector<128x1xf32> to vector<128x256xf32>
    %23 = arith.mulf %16, %22 : vector<128x256xf32>
    %c0_8 = arith.constant 0 : index
    %c0_9 = arith.constant 0 : index
    %24 = vector.load %arg4[%c0_8, %c0_9] : memref<128x256xf32, #tpu.memory_space<vmem>>, vector<128x256xf32>
    tpu.vector_store %arg4[%c0_8, %c0_9], %23 {strides = array<i32>} : memref<128x256xf32, #tpu.memory_space<vmem>>, vector<128x256xf32>,
    return
  }
  func.func @transform_0(%arg0: i32) -> (i32, i32) {
    %c0_i32 = arith.constant 0 : i32
    %c0_i32_0 = arith.constant 0 : i32
    return %arg0, %c0_i32 : i32, i32
  }
  func.func @transform_1(%arg0: i32) -> (i32, i32) {
    %c0_i32 = arith.constant 0 : i32
    %c0_i32_0 = arith.constant 0 : i32
    %c0_i32_1 = arith.constant 0 : i32
    return %c0_i32, %c0_i32_0 : i32, i32
  }
  func.func @transform_2(%arg0: i32) -> (i32, i32) {
    %c0_i32 = arith.constant 0 : i32
    %c0_i32_0 = arith.constant 0 : i32
    return %arg0, %c0_i32 : i32, i32
  }
  func.func @transform_3(%arg0: i32) -> (i32, i32) {
    %c0_i32 = arith.constant 0 : i32
    %c0_i32_0 = arith.constant 0 : i32
    return %arg0, %c0_i32 : i32, i32
  }
}

</mosaic_0001>

<bundles_post_ra>
// kernel: tpu_custom_call.1
= control target key start
LH: loop header
LB: loop body
LE: loop exit
PB: predicated region body
PF: predicated region fallthrough
CT: control target
= control target key end

     0   :  { %8 = vsyncpa [#allocation3], 0  ;;  %s1799_s0 = inlined_call_operand.vmem [shape: bf16[256,32], index: 0, kind: input, shape index: {}]   ;;  %s1800_s1 = inlined_call_operand.vmem [shape: bf16[32,256], index: 1, kind: input, shape index: {}]   ;;  %s1801_s2 = inlined_call_operand.vmem [shape: f32[256,1], index: 2, kind: input, shape index: {}]   ;;  %s1802_s3 = inlined_call_operand.hbm [shape: f32[256,256], index: 3, kind: output, shape index: {}]  }
   0x1   :  { %10 = vsyncpa [#allocation3 + $0x1], 0  ;;  %s1243_s12 = smov 0   ;;  %s1245_s13 = smov 0  }
   0x2   :  { %s1247_s14 = smov 0   ;;  %s1249_s15 = smov 0  }
   0x3 LB: > { %s1264_s16 = sadd.s32 4294967295, %s1216_s15   ;;  %s959_s17 = sadd.s32 4294967294, %s1216_s15   ;;  %s1216_s15 = sphi %s1249_s15, %s1832_s15   ;;  %s1212_s14 = sphi %s1247_s14, %s1831_s14   ;;  %s1208_s13 = sphi %s1245_s13, %s1830_s13   ;;  %s1204_s12 = sphi %s1243_s12, %s1829_s12  }
   0x4   : > { %s1268_s18 = sadd.s32 1, %s1216_s15   ;;  %s96_s19 = sadd.s32 1, %s1212_s14 }
   0x5   : > { %s93_s20 = ssub.s32 %s1216_s15, %s1268_s18  ;;  %p106_p0 = scmp.ne.s32.totalorder %s1212_s14, %s1208_s13 }
   0x6   : > { %p94_p1 = scmp.eq.s32.totalorder %s93_s20, 0  ;;  %p107_p2 = scmp.eq.s32.totalorder %s1264_s16, 1 }
   0x7   : > { %p112_p3 = scmp.ne.s32.totalorder %s1208_s13, %s1204_s12  ;;  %p113_p4 = scmp.eq.s32.totalorder %s959_s17, 1 }
   0x8   : > { %s1279_s21 = scalar_select %p94_p1, %s1212_s14, %s96_s19  }
   0x9   : > { %p1281_p5 = por %p107_p2, %p106_p0  ;;  %p1285_p6 = por %p113_p4, %p112_p3 }
   0xa   : > { %p962_p7 = scmp.ge.s32.totalorder %s1216_s15, 1  ;;  %p152_p8 = scmp.lt.s32.totalorder %s1216_s15, 3 }
   0xc   : > { %p153_p9 = pnand %p962_p7, %p152_p8 }
   0xd   : > { %s964_s26 = sshll.u32 (!%p153_p9), %s1264_s16, 4  ;;  %s178_s20 = sand.u32 (!%p153_p9), 1, %s1208_s13  }
   0xe   : > { %156 = sbr.rel (%p153_p9) target bundleno = 729 (0x2d9), region = 32  ;;  %p182_p10 = scmp.lt.s32.totalorder (!%p153_p9), %s964_s26, 31 }
   0xf   : > { %s963_s24 = sshll.u32 (!%p153_p9), %s178_s20, 8  ;;  %s1220_s5 = smov (!%p153_p9), [#allocation2]  }
  0x10   : > { %s1684_s25 = scalar_lea.vmem (!%p153_p9), [#allocation2], %s963_s24 }
  0x11   : > { %s885_s27 = sshll.u32 (!%p153_p9), %s1684_s25, 4  ;;  %s1751_s27 = int_to_ptr.vmem [resolvable:$true] %s885_s27 }
  0x12   : > { %s1156_s4 = scalar_lea.vmem (!%p153_p9), %s1751_s27, 4096 }
  0x13   : > { %v1046_v0 = vld [vmem:[%s1800_s1 + $0x14] ss:$8 sps:$4 sm:$0xff]   ;;  %v1048_v1 = vld [vmem:[%s1800_s1 + $0x10] ss:$8 sps:$4 sm:$0xff]   ;;  %v1218_v2 = vmov 0   ;;  %s1834_s26 = smov (!%p182_p10, %s964_s26), 31  ;;  %p1157_p11 = scmp.ne.s32.totalorder %s1751_s27, %s1156_s4 }
  0x14   : > { %332 = vmatprep.mubr.bf16.mxu0 %v1218_v2  ;;  %372 = vmatprep.mubr.bf16.mxu1 %v1218_v2  ;;  %v1049_v3 = vld [vmem:[%s1800_s1 + $0x4] ss:$8 sps:$4 sm:$0xff]   ;;  %v1051_v4 = vld [vmem:[%s1800_s1] ss:$8 sps:$4 sm:$0xff]   ;;  %s965_s6 = sshll.u32 %s1834_s26, 2  ;;  %vm275_vm0 = vcmask 261120  }
  0x15   : > { %312 = vmatprep.subr.bf16.mxu0 %v1046_v0  ;;  %997 = vmatprep.subr.bf16.mxu1 %v1046_v0  ;;  %s185_s9 = scalar_lea.vmem %s1799_s0, %s965_s6  ;;  %s967_s10 = sshll.u32 %s1834_s26, 3 }
  0x16   : > { %313 = vmatpush1.bf16.msra.mxu0 %v1048_v1  ;;  %999 = vmatpush1.bf16.msra.mxu1 %v1048_v1  ;;  %v1052_v5 = vld [vmem:[%s185_s9] sm:$0xff]   ;;  %v1054_v7 = vld [vmem:[%s185_s9 + $0x8] sm:$0xff]   ;;  %v1056_v9 = vld [vmem:[%s185_s9 + $0x10] sm:$0xff]   ;;  %s1661_s19 = scalar_lea.vmem %s1801_s2, %s967_s10  ;;  %s996_s26 = sshll.u32 %s1264_s16, 12 }
  0x17   : > { %314 = vmatprep.subr.bf16.mxu0 %v1049_v3  ;;  %998 = vmatprep.subr.bf16.mxu1 %v1049_v3  ;;  %v1053_v6 = vld [vmem:[%s185_s9 + $0x20] sm:$0xff]   ;;  %v1055_v8 = vld [vmem:[%s185_s9 + $0x28] sm:$0xff]   ;;  %v1057_v10 = vld [vmem:[%s185_s9 + $0x30] sm:$0xff]   ;;  %s1749_s30 = scalar_lea.hbm %s1802_s3, %s996_s26  ;;  %s1759_s16 = scalar_lea.sflag [#allocation3], %s178_s20 }
  0x18   : > { %1044 = vset.pattern.permute.xlu0 %v1218_v2  ;;  %1045 = vset.pattern.permute.xlu1 %v1218_v2  ;;  %v1058_v11 = vld [vmem:[%s185_s9 + $0x18] sm:$0xff]   ;;  %p1158_p12 = pnand %p1157_p11, %p1281_p5  ;;  %s1160_s6 = sshll.u32 %s1220_s5, 4  ;;  %s1161_s6 = int_to_ptr.vmem [resolvable:$false] %s1160_s6 }
  0x19   : > { %v1059_v12 = vld [vmem:[%s185_s9 + $0x38] sm:$0xff]   ;;  %s1162_s7 = scalar_lea.vmem %s1161_s6, 8192  ;;  %p1163_p0 = scmp.lt.s32.totalorder %s1751_s27, %s1161_s6 }
  0x1a   : > { %315 = vmatpush1.bf16.msra.mxu0 %v1051_v4  ;;  %1000 = vmatpush1.bf16.msra.mxu1 %v1051_v4  ;;  %p1159_p13 = pneg %p1158_p12  ;;  %p1164_p1 = scmp.lt.s32.totalorder %s1162_s7, %s1156_s4 }
  0x1c   : > { %p1165_p2 = por %p1164_p1, %p1163_p0 }
  0x1d   : > { %980 = vmatmul.mubr.msk.bf16.vlgmr.msra.gmra.mxu0 %vm275_vm0, %v1052_v5  ;;  %984 = vmatmul.mubr.msk.bf16.vlgmr.msra.gmra.mxu1 %vm275_vm0, %v1053_v6 }
  0x1e   : > { %342 = vmatprep.mubr.bf16.mxu0 %v1218_v2  ;;  %382 = vmatprep.mubr.bf16.mxu1 %v1218_v2  ;;  %p1166_p3 = pnand %p1165_p2, %p1159_p13 }
  0x25   : > { %981 = vmatmul.mubr.msk.bf16.gmra.mxu0 %vm275_vm0, %v1054_v7  ;;  %985 = vmatmul.mubr.msk.bf16.gmra.mxu1 %vm275_vm0, %v1055_v8 }
  0x26   : > { %352 = vmatprep.mubr.bf16.mxu0 %v1218_v2  ;;  %392 = vmatprep.mubr.bf16.mxu1 %v1218_v2 }
  0x2d   : > { %982 = vmatmul.mubr.msk.bf16.gmra.mxu0 %vm275_vm0, %v1056_v9  ;;  %986 = vmatmul.mubr.msk.bf16.gmra.mxu1 %vm275_vm0, %v1057_v10 }
  0x2e   : > { %362 = vmatprep.mubr.bf16.mxu0 %v1218_v2  ;;  %402 = vmatprep.mubr.bf16.mxu1 %v1218_v2 }
  0x35   : > { %983 = vmatmul.mubr.msk.bf16.gmra.mxu0 %vm275_vm0, %v1058_v11  ;;  %987 = vmatmul.mubr.msk.bf16.gmra.mxu1 %vm275_vm0, %v1059_v12 }
  0xdd   : > { %v1318_v13 = vpop.f32.mrf.mxu0  ;;  %v1320_v14 = vpop.f32.mrf.mxu1 }
  0xde   : > { %v413_v17 = vmax.f32 %v1318_v13, 0.0  ;;  %v429_v21 = vmax.f32 %v1320_v14, 0.0 }
  0xdf   : > { %v1322_v15 = vpop.f32.mrf.mxu0  ;;  %v1324_v16 = vpop.f32.mrf.mxu1 }
  0xe0   : > { %v414_v18 = vmax.f32 %v1322_v15, 0.0  ;;  %v430_v22 = vmax.f32 %v1324_v16, 0.0 }
  0xe1   : > { %v1328_v19 = vpop.f32.mrf.mxu0  ;;  %v1330_v20 = vpop.f32.mrf.mxu1 }
  0xe2   : > { %v445_v23 = vmax.f32 %v413_v17, %v414_v18  ;;  %v431_v26 = vmax.f32 %v1330_v20, 0.0  ;;  %v469_v33 = vmax.f32 %v429_v21, %v430_v22  ;;  %v415_v36 = vmax.f32 %v1328_v19, 0.0 }
  0xe3   : > { %v1338_v24 = vpop.f32.mrf.mxu0  ;;  %v1340_v25 = vpop.f32.mrf.mxu1 }
  0xe4   : > { %v432_v27 = vmax.f32 %v1340_v25, 0.0  ;;  %446 = vmax.xlane.f32.xlu0 %v445_v23  ;;  %v416_v30 = vmax.f32 %v1338_v24, 0.0 }
  0xe5   : > { %v1344_v28 = vpop.f32.mrf.mxu0  ;;  %v1346_v29 = vpop.f32.mrf.mxu1 }
  0xe6   : > { %v417_v31 = vmax.f32 %v1344_v28, 0.0  ;;  %v472_v32 = vmax.f32 %v431_v26, %v432_v27  ;;  %v433_v38 = vmax.f32 %v1346_v29, 0.0  ;;  %v448_v42 = vmax.f32 %v415_v36, %v416_v30 }
  0xe7   : > { %v1358_v34 = vpop.f32.mrf.mxu0  ;;  %v1360_v35 = vpop.f32.mrf.mxu1  ;;  %v1219_v29 = vmov 0.0  }
  0xe8   : > { %v418_v37 = vmax.f32 %v1358_v34, 0.0  ;;  %473 = vmax.xlane.f32.xlu1 %v472_v32  ;;  %470 = vmax.xlane.f32.xlu0 %v469_v33  ;;  %v434_v39 = vmax.f32 %v1360_v35, 0.0 }
  0xe9   : > { %v1366_v40 = vpop.f32.mrf.mxu0  ;;  %v1368_v41 = vpop.f32.mrf.mxu1 }
  0xea   : > { %v451_v43 = vmax.f32 %v417_v31, %v418_v37  ;;  %v419_v46 = vmax.f32 %v1366_v40, 0.0  ;;  %v475_v48 = vmax.f32 %v433_v38, %v434_v39  ;;  %v435_v51 = vmax.f32 %v1368_v41, 0.0 }
  0xeb   : > { %v1378_v44 = vpop.f32.mrf.mxu0  ;;  %v1380_v45 = vpop.f32.mrf.mxu1 }
  0xec   : > { %v420_v47 = vmax.f32 %v1378_v44, 0.0  ;;  %449 = vmax.xlane.f32.xlu0 %v448_v42  ;;  %452 = vmax.xlane.f32.xlu1 %v451_v43  ;;  %v436_v53 = vmax.f32 %v1380_v45, 0.0 }
  0xed   : > { %v1388_v49 = vpop.f32.mrf.mxu0  ;;  %v1390_v50 = vpop.f32.mrf.mxu1 }
  0xee   : > { %v421_v52 = vmax.f32 %v1388_v49, 0.0  ;;  %v454_v54 = vmax.f32 %v419_v46, %v420_v47  ;;  %v1812_v58 = vmax.f32 %v1390_v50, 0.0  ;;  %v478_v63 = vmax.f32 %v435_v51, %v436_v53 }
  0xef   : > { %v1399_v55 = vpop.f32.mrf.mxu0  ;;  %v1401_v56 = vpop.f32.mrf.mxu1  ;;  %v1817_v49 = vmax.f32 %v1390_v50, 0.0 }
  0xf0   : > { %v422_v57 = vmax.f32 %v1399_v55, 0.0  ;;  %476 = vmax.xlane.f32.xlu0 %v475_v48  ;;  %455 = vmax.xlane.f32.xlu1 %v454_v54  ;;  %v1811_v59 = vmax.f32 %v1401_v56, 0.0 }
  0xf1   : > { %v1406_v60 = vpop.f32.mrf.mxu0  ;;  %v1408_v61 = vpop.f32.mrf.mxu1 }
  0xf2   : > { %v1808_v62 = vmax.f32 %v1406_v60, 0.0  ;;  %v457_v0 = vmax.f32 %v421_v52, %v422_v57  ;;  %v1804_v4 = vmax.f32 %v1408_v61, 0.0  ;;  %v481_v6 = vmax.f32 %v1812_v58, %v1811_v59 }
  0xf3   : > { %v1419_v1 = vpop.f32.mrf.mxu0  ;;  %v1421_v2 = vpop.f32.mrf.mxu1 }
  0xf4   : > { %v1805_v3 = vmax.f32 %v1419_v1, 0.0  ;;  %479 = vmax.xlane.f32.xlu1 %v478_v63  ;;  %458 = vmax.xlane.f32.xlu0 %v457_v0  ;;  %v1803_v5 = vmax.f32 %v1421_v2, 0.0 }
  0xf5   : > { %v1430_v7 = vpop.f32.mrf.mxu0  ;;  %v1432_v8 = vpop.f32.mrf.mxu1 }
  0xf6   : > { %v1807_v9 = vmax.f32 %v1430_v7, 0.0  ;;  %v460_v10 = vmax.f32 %v1808_v62, %v1805_v3  ;;  %v1810_v32 = vmax.f32 %v1432_v8, 0.0  ;;  %v484_v42 = vmax.f32 %v1804_v4, %v1803_v5 }
  0xf7   : > { %v1439_v11 = vpop.f32.mrf.mxu0  ;;  %v1441_v12 = vpop.f32.mrf.mxu1 }
  0xf8   : > { %v1806_v23 = vmax.f32 %v1439_v11, 0.0  ;;  %482 = vmax.xlane.f32.xlu0 %v481_v6  ;;  %461 = vmax.xlane.f32.xlu1 %v460_v10  ;;  %v1809_v33 = vmax.f32 %v1441_v12, 0.0 }
  0xf9   : > { %v1450_v43 = vpop.f32.mrf.mxu0  ;;  %v1452_v48 = vpop.f32.mrf.mxu1 }
  0xfa   : > { %v1813_v54 = vmax.f32 %v1450_v43, 0.0  ;;  %v463_v63 = vmax.f32 %v1807_v9, %v1806_v23  ;;  %v1814_v5 = vmax.f32 %v1452_v48, 0.0  ;;  %v487_v3 = vmax.f32 %v1810_v32, %v1809_v33 }
  0xfb   : > { %v1459_v0 = vpop.f32.mrf.mxu0  ;;  %v1461_v6 = vpop.f32.mrf.mxu1  ;;  %v589_v9 = vlaneseq }
  0xfc   : > { %v428_v10 = vmax.f32 %v1459_v0, 0.0  ;;  %485 = vmax.xlane.f32.xlu1 %v484_v42  ;;  %464 = vmax.xlane.f32.xlu0 %v463_v63  ;;  %v444_v4 = vmax.f32 %v1461_v6, 0.0 }
  0xfe   : > { %v466_v23 = vmax.f32 %v1813_v54, %v428_v10  ;;  %v490_v42 = vmax.f32 %v1814_v5, %v444_v4 }
 0x100   : > { %488 = vmax.xlane.f32.xlu0 %v487_v3  ;;  %467 = vmax.xlane.f32.xlu1 %v466_v23  ;;  %v590_v3 = vand.u32 127, %v589_v9 }
 0x104   : > { %491 = vmax.xlane.f32.xlu1 %v490_v42 }
 0x16d   : > { %v447_v63 = vpop.xlane.xlu0 %446 }
 0x16e   : > { %v493_v62 = vsub.f32 %v413_v17, %v447_v63  ;;  %v494_v33 = vsub.f32 %v414_v18, %v447_v63  ;;  %v591_v63 = vadd.s32 128, %v590_v3 }
 0x170   : > { %v527_v32 = vmul.f32 1.442695, %v494_v33  ;;  %v525_v59 = vmul.f32 1.442695, %v493_v62  ;;  %vm593_vm1 = vcmp.lt.s32.totalorder %v591_v63, 200 }
 0x171   : > { %v474_v58 = vpop.xlane.xlu1 %473  ;;  %v471_v54 = vpop.xlane.xlu0 %470 }
 0x172   : > { %v511_v23 = vsub.f32 %v431_v26, %v474_v58  ;;  %v512_v5 = vsub.f32 %v432_v27, %v474_v58  ;;  %v509_v42 = vsub.f32 %v429_v21, %v471_v54  ;;  %1060 = vpow2.f32 %v527_v32 }
 0x173   : > { %v510_v13 = vsub.f32 %v430_v22, %v471_v54  ;;  %1062 = vpow2.f32 %v525_v59 }
 0x174   : > { %v561_v15 = vmul.f32 1.442695, %v511_v23  ;;  %v563_v17 = vmul.f32 1.442695, %v512_v5  ;;  %v557_v18 = vmul.f32 1.442695, %v509_v42 }
 0x175   : > { %v559_v62 = vmul.f32 1.442695, %v510_v13  ;;  %v450_v33 = vpop.xlane.xlu0 %449  ;;  %v453_v9 = vpop.xlane.xlu1 %452 }
 0x176   : > { %1064 = vpow2.f32 %v561_v15  ;;  %v495_v20 = vsub.f32 %v415_v36, %v450_v33  ;;  %v496_v14 = vsub.f32 %v416_v30, %v450_v33  ;;  %v497_v21 = vsub.f32 %v417_v31, %v453_v9 }
 0x177   : > { %1066 = vpow2.f32 %v563_v17  ;;  %v498_v16 = vsub.f32 %v418_v37, %v453_v9  ;;  %v1820_v17 = vmax.f32 %v1419_v1, 0.0 }
 0x178   : > { %1068 = vpow2.f32 %v557_v18  ;;  %v529_v22 = vmul.f32 1.442695, %v495_v20  ;;  %v531_v25 = vmul.f32 1.442695, %v496_v14  ;;  %v533_v26 = vmul.f32 1.442695, %v497_v21 }
 0x179   : > { %1070 = vpow2.f32 %v559_v62  ;;  %v535_v27 = vmul.f32 1.442695, %v498_v16  ;;  %v477_v58 = vpop.xlane.xlu0 %476  ;;  %v456_v59 = vpop.xlane.xlu1 %455  ;;  %v1821_v16 = vmax.f32 %v1408_v61, 0.0 }
 0x17a   : > { %1072 = vpow2.f32 %v529_v22  ;;  %v513_v19 = vsub.f32 %v433_v38, %v477_v58  ;;  %v514_v24 = vsub.f32 %v434_v39, %v477_v58  ;;  %v499_v28 = vsub.f32 %v419_v46, %v456_v59 }
 0x17b   : > { %1074 = vpow2.f32 %v531_v25  ;;  %v500_v30 = vsub.f32 %v420_v47, %v456_v59  ;;  %v1507_v38 = vsel %vm593_vm1, 1.0, %v1219_v29  ;;  %v1822_v22 = vmax.f32 %v1421_v2, 0.0 }
 0x17c   : > { %1076 = vpow2.f32 %v533_v26  ;;  %v565_v31 = vmul.f32 1.442695, %v513_v19  ;;  %v567_v34 = vmul.f32 1.442695, %v514_v24  ;;  %v537_v36 = vmul.f32 1.442695, %v499_v28 }
 0x17d   : > { %1078 = vpow2.f32 %v535_v27  ;;  %v539_v37 = vmul.f32 1.442695, %v500_v30  ;;  %v480_v5 = vpop.xlane.xlu1 %479  ;;  %v459_v32 = vpop.xlane.xlu0 %458  ;;  %v1823_v26 = vmax.f32 %v1430_v7, 0.0  ;;  %v1824_v59 = vmax.f32 %v1439_v11, 0.0 }
 0x17e   : > { %1080 = vpow2.f32 %v565_v31  ;;  %v515_v35 = vsub.f32 %v435_v51, %v480_v5  ;;  %v516_v39 = vsub.f32 %v436_v53, %v480_v5  ;;  %v501_v40 = vsub.f32 %v421_v52, %v459_v32 }
 0x17f   : > { %1082 = vpow2.f32 %v567_v34  ;;  %v502_v44 = vsub.f32 %v422_v57, %v459_v32  ;;  %v1061_v46 = vpop.eup %1060  ;;  %v1818_v53 = vmax.f32 %v1401_v56, 0.0  ;;  %v1819_v57 = vmax.f32 %v1406_v60, 0.0 }
 0x180   : > { %1084 = vpow2.f32 %v537_v36  ;;  %v569_v47 = vmul.f32 1.442695, %v515_v35  ;;  %v571_v54 = vmul.f32 1.442695, %v516_v39  ;;  %v541_v3 = vmul.f32 1.442695, %v501_v40  ;;  %v1520_v45 = vpop.eup %1062 }
 0x181   : > { %1086 = vpow2.f32 %v539_v37  ;;  %v543_v23 = vmul.f32 1.442695, %v502_v44  ;;  %v483_v42 = vpop.xlane.xlu0 %482  ;;  %v462_v41 = vpop.xlane.xlu1 %461  ;;  %v1518_v51 = vmul.f32 %v1061_v46, %v1507_v38  ;;  %v1825_v29 = vmax.f32 %v1432_v8, 0.0 }
 0x182   : > { %1088 = vpow2.f32 %v569_v47  ;;  %v517_v52 = vsub.f32 %v1817_v49, %v483_v42  ;;  %v518_v55 = vsub.f32 %v1818_v53, %v483_v42  ;;  %v503_v13 = vsub.f32 %v1819_v57, %v462_v41 }
 0x183   : > { %v1528_v15 = vpop.eup %1064  ;;  %1090 = vpow2.f32 %v571_v54  ;;  %v504_v18 = vsub.f32 %v1820_v17, %v462_v41  ;;  %v630_v62 = vadd.f32 %v1520_v45, %v1518_v51  ;;  %v1826_v39 = vmax.f32 %v1441_v12, 0.0 }
 0x184   : > { %v1067_v33 = vpop.eup %1066  ;;  %1092 = vpow2.f32 %v541_v3  ;;  %v573_v9 = vmul.f32 1.442695, %v517_v52  ;;  %v575_v50 = vmul.f32 1.442695, %v518_v55  ;;  %v545_v21 = vmul.f32 1.442695, %v503_v13 }
 0x185   : > { %v1534_v63 = vpop.eup %1068  ;;  %1094 = vpow2.f32 %v543_v23  ;;  %v547_v56 = vmul.f32 1.442695, %v504_v18  ;;  %631 = vadd.xlane.f32.xlu0 %v630_v62  ;;  %v486_v60 = vpop.xlane.xlu1 %485  ;;  %v1550_v31 = vmul.f32 %v1067_v33, %v1507_v38  ;;  %v1827_v12 = vmax.f32 %v1450_v43, 0.0 }
 0x186   : > { %v465_v20 = vpop.xlane.xlu0 %464  ;;  %v1071_v14 = vpop.eup %1070  ;;  %v519_v1 = vsub.f32 %v1821_v16, %v486_v60  ;;  %v520_v25 = vsub.f32 %v1822_v22, %v486_v60  ;;  %1096 = vpow2.f32 %v575_v50 }
 0x187   : > { %v505_v27 = vsub.f32 %v1823_v26, %v465_v20  ;;  %v1542_v58 = vpop.eup %1072  ;;  %v506_v19 = vsub.f32 %v1824_v59, %v465_v20  ;;  %v1547_v24 = vmul.f32 %v1071_v14, %v1507_v38  ;;  %1098 = vpow2.f32 %v573_v9 }
 0x188   : > { %v1075_v28 = vpop.eup %1074  ;;  %v577_v30 = vmul.f32 1.442695, %v519_v1  ;;  %v579_v61 = vmul.f32 1.442695, %v520_v25  ;;  %1100 = vpow2.f32 %v547_v56  ;;  %v657_v13 = vadd.f32 %v1528_v15, %v1550_v31 }
 0x189   : > { %v1552_v2 = vpop.eup %1076  ;;  %v551_v7 = vmul.f32 1.442695, %v506_v19  ;;  %v654_v34 = vadd.f32 %v1534_v63, %v1547_v24  ;;  %v468_v11 = vpop.xlane.xlu1 %467  ;;  %v1557_v37 = vmul.f32 %v1075_v28, %v1507_v38  ;;  %1102 = vpow2.f32 %v545_v21 }
 0x18a   : > { %v489_v36 = vpop.xlane.xlu0 %488  ;;  %v1079_v5 = vpop.eup %1078  ;;  %v549_v32 = vmul.f32 1.442695, %v505_v27  ;;  %1104 = vpow2.f32 %v579_v61  ;;  %v508_v46 = vsub.f32 %v428_v10, %v468_v11  ;;  %v507_v42 = vsub.f32 %v1827_v12, %v468_v11 }
 0x18b   : > { %v521_v35 = vsub.f32 %v1825_v29, %v489_v36  ;;  %v522_v40 = vsub.f32 %v1826_v39, %v489_v36  ;;  %v1563_v44 = vpop.eup %1080  ;;  %655 = vadd.xlane.f32.xlu0 %v654_v34  ;;  %v1568_v47 = vmul.f32 %v1079_v5, %v1507_v38  ;;  %v633_v54 = vadd.f32 %v1542_v58, %v1557_v37 }
 0x18c   : > { %v1083_v3 = vpop.eup %1082  ;;  %1106 = vpow2.f32 %v577_v30  ;;  %v555_v49 = vmul.f32 1.442695, %v508_v46  ;;  %v553_v6 = vmul.f32 1.442695, %v507_v42 }
 0x18d   : > { %v581_v8 = vmul.f32 1.442695, %v521_v35  ;;  %v583_v23 = vmul.f32 1.442695, %v522_v40  ;;  %v1574_v41 = vpop.eup %1084  ;;  %1108 = vpow2.f32 %v551_v7  ;;  %v636_v0 = vadd.f32 %v1552_v2, %v1568_v47  ;;  %634 = vadd.xlane.f32.xlu1 %v633_v54  ;;  %v492_v10 = vpop.xlane.xlu1 %491 }
 0x18e   : > { %v1579_v52 = vmul.f32 %v1083_v3, %v1507_v38  ;;  %v1087_v53 = vpop.eup %1086  ;;  %1110 = vpow2.f32 %v549_v32  ;;  %v524_v55 = vsub.f32 %v444_v4, %v492_v10  ;;  %v1828_v4 = vmax.f32 %v1452_v48, 0.0 }
 0x18f   : > { %v1583_v57 = vpop.eup %1088  ;;  %1112 = vpow2.f32 %v583_v23  ;;  %637 = vadd.xlane.f32.xlu0 %v636_v0  ;;  %v1590_v17 = vmul.f32 %v1087_v53, %v1507_v38 }
 0x190   : > { %v660_v43 = vadd.f32 %v1563_v44, %v1579_v52  ;;  %v1091_v18 = vpop.eup %1090  ;;  %1114 = vpow2.f32 %v581_v8  ;;  %v587_v62 = vmul.f32 1.442695, %v524_v55  ;;  %v523_v9 = vsub.f32 %v1828_v4, %v492_v10  ;;  %v678_v55 = vld [vmem:[%s1661_s19] sm:$0xff] }
 0x191   : > { %v1592_v33 = vpop.eup %1092  ;;  %1116 = vpow2.f32 %v555_v49  ;;  %658 = vadd.xlane.f32.xlu1 %v657_v13  ;;  %v639_v60 = vadd.f32 %v1574_v41, %v1590_v17  ;;  %v1602_v20 = vmul.f32 %v1091_v18, %v1507_v38 }
 0x192   : > { %v1095_v50 = vpop.eup %1094  ;;  %1118 = vpow2.f32 %v587_v62  ;;  %v585_v16 = vmul.f32 1.442695, %v523_v9 }
 0x193   : > { %661 = vadd.xlane.f32.xlu0 %v660_v43  ;;  %v1597_v56 = vmul.f32 %v1095_v50, %v1507_v38  ;;  %v1097_v14 = vpop.eup %1096  ;;  %1120 = vpow2.f32 %v553_v6  ;;  %v663_v27 = vadd.f32 %v1583_v57, %v1602_v20  ;;  %v686_v6 = vld [vmem:[%s1661_s19 + $0x40] sm:$0xff] }
 0x194   : > { %v1604_v21 = vpop.eup %1098  ;;  %v1609_v1 = vmul.f32 %v1097_v14, %v1507_v38  ;;  %1122 = vpow2.f32 %v585_v16 }
 0x195   : > { %v642_v48 = vadd.f32 %v1592_v33, %v1597_v56  ;;  %640 = vadd.xlane.f32.xlu1 %v639_v60  ;;  %v1101_v22 = vpop.eup %1100  ;;  %v679_v60 = vld [vmem:[%s1661_s19 + $0x8] sm:$0xff] }
 0x196   : > { %v1611_v25 = vpop.eup %1102  ;;  %v666_v26 = vadd.f32 %v1604_v21, %v1609_v1  ;;  %v1618_v59 = vmul.f32 %v1101_v22, %v1507_v38 }
 0x197   : > { %643 = vadd.xlane.f32.xlu0 %v642_v48  ;;  %v1105_v19 = vpop.eup %1104 }
 0x198   : > { %v645_v34 = vadd.f32 %v1611_v25, %v1618_v59  ;;  %v1630_v36 = vmul.f32 %v1105_v19, %v1507_v38 }
 0x199   : > { %v1620_v28 = vpop.eup %1106  ;;  %664 = vadd.xlane.f32.xlu1 %v663_v27 }
 0x19a   : > { %v1109_v30 = vpop.eup %1108  ;;  %v669_v40 = vadd.f32 %v1620_v28, %v1630_v36 }
 0x19b   : > { %v1622_v61 = vpop.eup %1110  ;;  %667 = vadd.xlane.f32.xlu0 %v666_v26  ;;  %v1625_v7 = vmul.f32 %v1109_v30, %v1507_v38  ;;  %v687_v26 = vld [vmem:[%s1661_s19 + $0x48] sm:$0xff] }
 0x19c   : > { %v1113_v11 = vpop.eup %1112 }
 0x19d   : > { %v1632_v5 = vpop.eup %1114  ;;  %v648_v32 = vadd.f32 %v1622_v61, %v1625_v7  ;;  %646 = vadd.xlane.f32.xlu1 %v645_v34  ;;  %v1637_v29 = vmul.f32 %v1113_v11, %v1507_v38  ;;  %v680_v34 = vld [vmem:[%s1661_s19 + $0x10] sm:$0xff] }
 0x19e   : > { %v1117_v35 = vpop.eup %1116 }
 0x19f   : > { %649 = vadd.xlane.f32.xlu0 %v648_v32  ;;  %v672_v39 = vadd.f32 %v1632_v5, %v1637_v29  ;;  %v1644_v46 = vmul.f32 %v1117_v35, %v1507_v38  ;;  %v1119_v54 = vpop.eup %1118 }
 0x1a0   : > { %v1646_v3 = vpop.eup %1120  ;;  %v1651_v23 = vmul.f32 %v1119_v54, %v1507_v38 }
 0x1a1   : > { %670 = vadd.xlane.f32.xlu1 %v669_v40  ;;  %v651_v8 = vadd.f32 %v1646_v3, %v1644_v46  ;;  %v1653_v12 = vpop.eup %1122  ;;  %v688_v40 = vld [vmem:[%s1661_s19 + $0x50] sm:$0xff] }
 0x1a2   : > { %v675_v42 = vadd.f32 %v1653_v12, %v1651_v23 }
 0x1a3   : > { %673 = vadd.xlane.f32.xlu0 %v672_v39 }
 0x1a5   : > { %652 = vadd.xlane.f32.xlu1 %v651_v8  ;;  %v689_v8 = vld [vmem:[%s1661_s19 + $0x58] sm:$0xff] }
 0x1a9   : > { %676 = vadd.xlane.f32.xlu1 %v675_v42 }
 0x20e   : > { %v632_v49 = vpop.xlane.xlu0 %631 }
 0x20f   : > { %1124 = vrcp.f32 %v632_v49 }
 0x214   : > { %v656_v0 = vpop.xlane.xlu0 %655 }
 0x215   : > { %1126 = vrcp.f32 %v656_v0 }
 0x216   : > { %v635_v10 = vpop.xlane.xlu1 %634 }
 0x217   : > { %1128 = vrcp.f32 %v635_v10 }
 0x218   : > { %v638_v38 = vpop.xlane.xlu0 %637 }
 0x219   : > { %1130 = vrcp.f32 %v638_v38  ;;  %v681_v38 = vld [vmem:[%s1661_s19 + $0x18] sm:$0xff] }
 0x21a   : > { %v659_v53 = vpop.xlane.xlu1 %658 }
 0x21b   : > { %1132 = vrcp.f32 %v659_v53 }
 0x21c   : > { %v1125_v43 = vpop.eup %1124  ;;  %v662_v13 = vpop.xlane.xlu0 %661 }
 0x21d   : > { %v710_v18 = vmul.f32 %v1125_v43, %v678_v55  ;;  %1134 = vrcp.f32 %v662_v13 }
 0x21e   : > { %v641_v62 = vpop.xlane.xlu1 %640 }
 0x21f   : > { %728 = vperm.xlu0 %1044, %v710_v18   ;;  %1136 = vrcp.f32 %v641_v62  ;;  %v682_v18 = vld [vmem:[%s1661_s19 + $0x20] sm:$0xff]  ;;  %v691_v62 = vld [vmem:[%s1661_s19 + $0x68] sm:$0xff] }
 0x220   : > { %v644_v4 = vpop.xlane.xlu0 %643 }
 0x222   : > { %v1127_v9 = vpop.eup %1126  ;;  %v665_v50 = vpop.xlane.xlu1 %664 }
 0x223   : > { %1138 = vrcp.f32 %v665_v50  ;;  %v718_v14 = vmul.f32 %v1127_v9, %v686_v6 }
 0x224   : > { %v1129_v16 = vpop.eup %1128  ;;  %1140 = vrcp.f32 %v644_v4  ;;  %v668_v19 = vpop.xlane.xlu0 %667 }
 0x225   : > { %768 = vperm.xlu1 %1045, %v718_v14   ;;  %v711_v48 = vmul.f32 %v1129_v16, %v679_v60  ;;  %1142 = vrcp.f32 %v668_v19  ;;  %v690_v60 = vld [vmem:[%s1661_s19 + $0x60] sm:$0xff] }
 0x226   : > { %v647_v22 = vpop.xlane.xlu1 %646  ;;  %v1131_v27 = vpop.eup %1130 }
 0x227   : > { %v712_v35 = vmul.f32 %v1131_v27, %v680_v34  ;;  %v684_v34 = vld [vmem:[%s1661_s19 + $0x30] sm:$0xff] }
 0x228   : > { %v1133_v30 = vpop.eup %1132  ;;  %v650_v49 = vpop.xlane.xlu0 %649 }
 0x229   : > { %733 = vperm.xlu1 %1045, %v711_v48   ;;  %v719_v11 = vmul.f32 %v1133_v30, %v687_v26  ;;  %v693_v26 = vld [vmem:[%s1661_s19 + $0x78] sm:$0xff] }
 0x22a   : > { %v671_v32 = vpop.xlane.xlu1 %670  ;;  %v1135_v39 = vpop.eup %1134 }
 0x22b   : > { %1144 = vrcp.f32 %v671_v32  ;;  %773 = vperm.xlu0 %1044, %v719_v11   ;;  %v720_v0 = vmul.f32 %v1135_v39, %v688_v40  ;;  %v685_v39 = vld [vmem:[%s1661_s19 + $0x38] sm:$0xff] }
 0x22c   : > { %v1137_v42 = vpop.eup %1136  ;;  %1146 = vrcp.f32 %v647_v22  ;;  %v674_v50 = vpop.xlane.xlu0 %673  ;;  %v683_v22 = vld [vmem:[%s1661_s19 + $0x28] sm:$0xff] }
 0x22d   : > { %738 = vperm.xlu1 %1045, %v712_v35   ;;  %1148 = vrcp.f32 %v650_v49  ;;  %v713_v43 = vmul.f32 %v1137_v42, %v681_v38 }
 0x22e   : > { %v653_v54 = vpop.xlane.xlu1 %652 }
 0x230   : > { %v1139_v10 = vpop.eup %1138 }
 0x231   : > { %778 = vperm.xlu1 %1045, %v720_v0   ;;  %v721_v53 = vmul.f32 %v1139_v10, %v689_v8  ;;  %v1141_v13 = vpop.eup %1140  ;;  %v692_v8 = vld [vmem:[%s1661_s19 + $0x70] sm:$0xff] }
 0x232   : > { %v677_v55 = vpop.xlane.xlu1 %676  ;;  %v1143_v6 = vpop.eup %1142  ;;  %v714_v4 = vmul.f32 %v1141_v13, %v682_v18 }
 0x233   : > { %1150 = vrcp.f32 %v677_v55  ;;  %783 = vperm.xlu0 %1044, %v721_v53   ;;  %v722_v16 = vmul.f32 %v1143_v6, %v690_v60 }
 0x234   : > { %1152 = vrcp.f32 %v653_v54 }
 0x235   : > { %743 = vperm.xlu1 %1045, %v713_v43   ;;  %1154 = vrcp.f32 %v674_v50 }
 0x238   : > { %v1145_v9 = vpop.eup %1144 }
 0x239   : > { %748 = vperm.xlu1 %1045, %v714_v4   ;;  %v723_v14 = vmul.f32 %v1145_v9, %v691_v62  ;;  %v1147_v48 = vpop.eup %1146 }
 0x23a   : > { %v1149_v27 = vpop.eup %1148  ;;  %v715_v19 = vmul.f32 %v1147_v48, %v683_v22 }
 0x23b   : > { %793 = vperm.xlu0 %1044, %v723_v14   ;;  %v716_v32 = vmul.f32 %v1149_v27, %v684_v34 }
 0x23d   : > { %788 = vperm.xlu1 %1045, %v722_v16  }
 0x240   : > { %v1151_v30 = vpop.eup %1150 }
 0x241   : > { %753 = vperm.xlu1 %1045, %v715_v19   ;;  %v725_v11 = vmul.f32 %v1151_v30, %v693_v26  ;;  %v1153_v35 = vpop.eup %1152 }
 0x242   : > { %v717_v40 = vmul.f32 %v1153_v35, %v685_v39  ;;  %v1155_v54 = vpop.eup %1154 }
 0x243   : > { %803 = vperm.xlu0 %1044, %v725_v11   ;;  %v724_v42 = vmul.f32 %v1155_v54, %v692_v8 }
 0x245   : > { %758 = vperm.xlu1 %1045, %v716_v32  }
 0x249   : > { %763 = vperm.xlu1 %1045, %v717_v40  }
 0x24d   : > { %798 = vperm.xlu1 %1045, %v724_v42  }
 0x29a   : > { %v729_v49 = vpop.permute.xlu0 %728 }
 0x29b   : > { %v806_v0 = vmul.f32 %v1520_v45, %v729_v49  ;;  %v807_v10 = vmul.f32 %v729_v49, %v1518_v51 }
 0x29d   : > { %838 = vst [vmem:[%s1684_s25] sm:$0xff] %v806_v0  ;;  %839 = vst [vmem:[%s1684_s25 + $0x8] sm:$0xff] %v807_v10 }
 0x2a0   : > { %v769_v38 = vpop.permute.xlu1 %768 }
 0x2a1   : > { %v822_v53 = vmul.f32 %v1534_v63, %v769_v38  ;;  %v823_v55 = vmul.f32 %v769_v38, %v1547_v24 }
 0x2a3   : > { %854 = vst [vmem:[%s1684_s25 + $0x80] sm:$0xff] %v822_v53  ;;  %855 = vst [vmem:[%s1684_s25 + $0x88] sm:$0xff] %v823_v55 }
 0x2a4   : > { %v734_v51 = vpop.permute.xlu1 %733 }
 0x2a5   : > { %v808_v45 = vmul.f32 %v1542_v58, %v734_v51  ;;  %v809_v43 = vmul.f32 %v734_v51, %v1557_v37 }
 0x2a6   : > { %v774_v13 = vpop.permute.xlu0 %773 }
 0x2a7   : > { %840 = vst [vmem:[%s1684_s25 + $0x10] sm:$0xff] %v808_v45  ;;  %841 = vst [vmem:[%s1684_s25 + $0x18] sm:$0xff] %v809_v43  ;;  %v824_v18 = vmul.f32 %v1528_v15, %v774_v13  ;;  %v825_v63 = vmul.f32 %v774_v13, %v1550_v31 }
 0x2a8   : > { %v739_v62 = vpop.permute.xlu1 %738 }
 0x2a9   : > { %856 = vst [vmem:[%s1684_s25 + $0x90] sm:$0xff] %v824_v18  ;;  %857 = vst [vmem:[%s1684_s25 + $0x98] sm:$0xff] %v825_v63  ;;  %v810_v24 = vmul.f32 %v1552_v2, %v739_v62  ;;  %v811_v58 = vmul.f32 %v739_v62, %v1568_v47 }
 0x2ab   : > { %842 = vst [vmem:[%s1684_s25 + $0x20] sm:$0xff] %v810_v24  ;;  %843 = vst [vmem:[%s1684_s25 + $0x28] sm:$0xff] %v811_v58 }
 0x2ac   : > { %v779_v37 = vpop.permute.xlu1 %778 }
 0x2ad   : > { %v826_v6 = vmul.f32 %v1563_v44, %v779_v37  ;;  %v827_v15 = vmul.f32 %v779_v37, %v1579_v52 }
 0x2ae   : > { %v784_v4 = vpop.permute.xlu0 %783 }
 0x2af   : > { %858 = vst [vmem:[%s1684_s25 + $0xa0] sm:$0xff] %v826_v6  ;;  %859 = vst [vmem:[%s1684_s25 + $0xa8] sm:$0xff] %v827_v15  ;;  %v828_v31 = vmul.f32 %v1583_v57, %v784_v4  ;;  %v829_v2 = vmul.f32 %v784_v4, %v1602_v20 }
 0x2b0   : > { %v744_v9 = vpop.permute.xlu1 %743 }
 0x2b1   : > { %860 = vst [vmem:[%s1684_s25 + $0xb0] sm:$0xff] %v828_v31  ;;  %861 = vst [vmem:[%s1684_s25 + $0xb8] sm:$0xff] %v829_v2  ;;  %v812_v47 = vmul.f32 %v1574_v41, %v744_v9  ;;  %v813_v44 = vmul.f32 %v744_v9, %v1590_v17 }
 0x2b3   : > { %844 = vst [vmem:[%s1684_s25 + $0x30] sm:$0xff] %v812_v47  ;;  %845 = vst [vmem:[%s1684_s25 + $0x38] sm:$0xff] %v813_v44 }
 0x2b4   : > { %v749_v52 = vpop.permute.xlu1 %748 }
 0x2b5   : > { %v814_v50 = vmul.f32 %v1592_v33, %v749_v52  ;;  %v815_v57 = vmul.f32 %v749_v52, %v1597_v56 }
 0x2b6   : > { %v794_v60 = vpop.permute.xlu0 %793 }
 0x2b7   : > { %846 = vst [vmem:[%s1684_s25 + $0x40] sm:$0xff] %v814_v50  ;;  %847 = vst [vmem:[%s1684_s25 + $0x48] sm:$0xff] %v815_v57  ;;  %v832_v20 = vmul.f32 %v1620_v28, %v794_v60  ;;  %v833_v41 = vmul.f32 %v794_v60, %v1630_v36 }
 0x2b8   : > { %v789_v14 = vpop.permute.xlu1 %788 }
 0x2b9   : > { %864 = vst [vmem:[%s1684_s25 + $0xd0] sm:$0xff] %v832_v20  ;;  %865 = vst [vmem:[%s1684_s25 + $0xd8] sm:$0xff] %v833_v41  ;;  %v830_v17 = vmul.f32 %v1604_v21, %v789_v14  ;;  %v831_v33 = vmul.f32 %v789_v14, %v1609_v1 }
 0x2bb   : > { %862 = vst [vmem:[%s1684_s25 + $0xc0] sm:$0xff] %v830_v17  ;;  %863 = vst [vmem:[%s1684_s25 + $0xc8] sm:$0xff] %v831_v33 }
 0x2bc   : > { %v754_v56 = vpop.permute.xlu1 %753 }
 0x2bd   : > { %v816_v16 = vmul.f32 %v1611_v25, %v754_v56  ;;  %v817_v28 = vmul.f32 %v754_v56, %v1618_v59 }
 0x2be   : > { %v804_v36 = vpop.permute.xlu0 %803 }
 0x2bf   : > { %848 = vst [vmem:[%s1684_s25 + $0x50] sm:$0xff] %v816_v16  ;;  %849 = vst [vmem:[%s1684_s25 + $0x58] sm:$0xff] %v817_v28  ;;  %v836_v21 = vmul.f32 %v1653_v12, %v804_v36  ;;  %v837_v1 = vmul.f32 %v804_v36, %v1651_v23 }
 0x2c0   : > { %v759_v48 = vpop.permute.xlu1 %758 }
 0x2c1   : > { %868 = vst [vmem:[%s1684_s25 + $0xf0] sm:$0xff] %v836_v21  ;;  %869 = vst [vmem:[%s1684_s25 + $0xf8] sm:$0xff] %v837_v1  ;;  %v818_v22 = vmul.f32 %v1622_v61, %v759_v48  ;;  %v819_v25 = vmul.f32 %v759_v48, %v1625_v7 }
 0x2c3   : > { %850 = vst [vmem:[%s1684_s25 + $0x60] sm:$0xff] %v818_v22  ;;  %851 = vst [vmem:[%s1684_s25 + $0x68] sm:$0xff] %v819_v25 }
 0x2c4   : > { %v764_v59 = vpop.permute.xlu1 %763 }
 0x2c5   : > { %v820_v26 = vmul.f32 %v1646_v3, %v764_v59  ;;  %v821_v12 = vmul.f32 %v764_v59, %v1644_v46 }
 0x2c7   : > { %852 = vst [vmem:[%s1684_s25 + $0x70] sm:$0xff] %v820_v26  ;;  %853 = vst [vmem:[%s1684_s25 + $0x78] sm:$0xff] %v821_v12 }
 0x2c8   : > { %v799_v23 = vpop.permute.xlu1 %798 }
 0x2c9   : > { %v834_v61 = vmul.f32 %v1632_v5, %v799_v23  ;;  %v835_v7 = vmul.f32 %v799_v23, %v1637_v29 }
 0x2cb   : > { %866 = vst [vmem:[%s1684_s25 + $0xe0] sm:$0xff] %v834_v61  ;;  %867 = vst [vmem:[%s1684_s25 + $0xe8] sm:$0xff] %v835_v7 }
 0x2cc   : > { %1169 = shalt.err (!%p1166_p3)
}
 0x2cd   : > { %s1170_s8 = scalar_lea.hbm %s1749_s30, 4096  ;;  %s1174_s11 = scalar_lea.hbm %s1802_s3, 8192 }
 0x2ce   : > { %p1171_p4 = scmp.ne.s32.totalorder %s1749_s30, %s1170_s8  ;;  %p1175_p9 = scmp.lt.s32.totalorder %s1749_s30, %s1802_s3 }
 0x2cf   : > { %p1176_p10 = scmp.lt.s32.totalorder %s1174_s11, %s1170_s8 }
 0x2d0   : > { %p1172_p7 = pnand %p1171_p4, %p1281_p5 }
 0x2d1   : > { %p1177_p11 = por %p1176_p10, %p1175_p9 }
 0x2d2   : > { %p1173_p8 = pneg %p1172_p7 }
 0x2d4   : > { %p1178_p12 = pnand %p1177_p11, %p1173_p8 }
 0x2d6   : > { %1181 = shalt.err (!%p1178_p12)
}
 0x2d7   : > { %s1221_s20 = smov 256   ;;  %s1222_s24 = smov 16  }
 0x2d8   : > { %1001 = dma.vmem_to_hbm [thread:$0]  (%p1281_p5), %s1751_s27, 4096, %s1749_s30, %s1759_s16, %s1221_s20, %s1221_s20, %s1222_s24  }
 0x2d9 PF: > { %p1007_p13 = scmp.ge.s32.totalorder %s1216_s15, 2  ;;  %s900_s25 = sand.u32 1, %s1204_s12  }
 0x2da   : > { %s901_s26 = scalar_lea.sflag [#allocation3], %s900_s25 }
 0x2db   : > { %p1004_p0 = pnand %p1007_p13, %p1285_p6 }
 0x2dd   : > { %p1005_p1 = pneg %p1004_p0 }
 0x2df   : > { %1199 = dma.done.wait (%p1005_p1), %s901_s26, 4096  }
 0x2e0   : > { %1201 = vsyncadd (%p1005_p1), %s901_s26, 4294963200  ;;  %p13_p2 = scmp.ge.s32.totalorder %s1268_s18, 4   ;;  %s1829_s12 = smov %s1208_s13 }
 0x2e1   : > { %s1830_s13 = smov %s1212_s14  ;;  %s1831_s14 = smov %s1279_s21 }
 0x2e2   : > { %s1832_s15 = smov %s1268_s18  ;;  %15 = sbr.rel (!%p13_p2) target bundleno = 3 (0x3), region = 70 }
 0x2e7   :  { %906 = vsyncpa [#allocation3], 1 }
 0x2e8   :  { %908 = vsyncpa [#allocation3 + $0x1], 1 }

</bundles_post_ra>
